<compile_context>
chip_gen: v6e
topology: v6e:2x2x1
jax: 0.10.0
libtpu: 0.0.40
codegen_flags: <defaults>
</compile_context>

<pallas_src>
import functools

import jax
import jax.numpy as jnp
import numpy as np
from jax.experimental import pallas as pl
from jax.experimental.pallas import tpu as pltpu


def _maxplus_atom_kernel(params_ref, w_ref, mask_ref, x_ref, o_ref, *,
                         W, KH, KW, PH, PW, HW):
    # params_ref: (4,)        f32 SMEM -- [scale, bias, out_sign, out_offset]
    # w_ref:      (KH*KW,)    f32 SMEM -- flattened structuring element
    # mask_ref:   (KH*KW, HW) f32 VMEM -- per-tap 0/1 source-validity masks
    # x_ref:      (TBC, HW)   f32 VMEM -- (batch*channel, H*W) input slab
    # o_ref:      (TBC, HW)   f32 VMEM
    scale = params_ref[0]
    bias = params_ref[1]
    sign = params_ref[2]
    off = params_ref[3]

    # Complementation, pre-folded to one scale/bias: (2a-1)*x + (1-a).
    comp = scale * x_ref[...] + bias

    # Max-plus dilation.  The center tap (di,dj)=(PH,PW) has every source in
    # range, so it needs neither a roll nor a mask; use it to seed the max.
    acc = comp + w_ref[PH * KW + PW]

    for di in range(KH):
        for dj in range(KW):
            if di == PH and dj == PW:
                continue
            t = di * KW + dj
            s = (di - PH) * W + (dj - PW)        # flattened source offset
            # rolled[k] == comp[(k + s) mod HW].  Positions whose true source
            # falls outside the image get the Unfolder's zero padding via the
            # multiplicative 0/1 mask, so tap == w[t] there (NOT -inf: the
            # zero-pad taps do participate in the max, as in nn.Unfold).
            rolled = pltpu.roll(comp, shift=(-s) % HW, axis=1)
            tap = rolled * mask_ref[t, :] + w_ref[t]
            acc = jnp.maximum(acc, tap)

    # "thresholded_alpha < 1/2 -> 1 - out" folded to one affine store.
    o_ref[...] = (acc * sign + off).astype(o_ref.dtype)


def _choose_sublane_tile(bc, hw):
    """Channels (sublane rows) per grid step.

    The tile must divide B*C and be a multiple of 8 (sublane) or the full
    extent.  Preference order:
      1. per-step slab <= ~1 MiB (double-buffered in/out + masks + live
         temporaries stay well under scoped-VMEM defaults, incl. v7x 32 MiB),
      2. >=8 grid steps with >=512 KiB slabs (hides ~0.35 us/step overhead and
         the prologue/epilogue DMAs; feeds both v7x TensorCores),
      3. relax toward >=4, then >=2 steps for small problems,
      4. otherwise take everything in one step.
    """
    if bc % 8 != 0:
        return bc                                  # full-extent block only
    cands = [t for t in range(8, bc + 1, 8) if bc % t == 0]
    bytes_of = lambda t: t * hw * 4
    fit = [t for t in cands if bytes_of(t) <= (1 << 20)] or [min(cands)]
    for min_steps, min_bytes in ((8, 512 << 10), (8, 64 << 10),
                                 (4, 32 << 10), (2, 0)):
        good = [t for t in fit
                if bc // t >= min_steps and bytes_of(t) >= min_bytes]
        if good:
            return max(good)
    # TODO(synk): for tiny B*C (< 16) a second parallel grid axis over H
    # (with a PH halo) would be needed to keep both v7x TensorCores busy.
    return max(fit)


@functools.partial(jax.jit, static_argnames=("kernel_size",))
def maxplus_atom(x, weight, alpha, *, kernel_size):
    """x: (B, C, H, W) float32 (NCHW).  Returns (B, C, H, W) float32."""
    B, C, H, W = x.shape
    KH, KW = kernel_size
    if KH % 2 == 0 or KW % 2 == 0:
        raise NotImplementedError(
            "padding='same' is implemented for odd kernel sizes only "
            "(PyTorch-style even-kernel 'same' pads asymmetrically).")
    PH, PW = KH // 2, KW // 2
    BC, HW = B * C, H * W
    KT = KH * KW

    # Scalar parameter preprocessing (tanh threshold, P_=1).
    #   complementation:  comp = a*x + (1-a)*(1-x) = (2a-1)*x + (1-a)
    #   final branch:     a < 1/2 (strict)  ->  out := 1 - out
    a = 0.5 * (jnp.tanh(jnp.reshape(alpha, ())) + 1.0)
    scale = 2.0 * a - 1.0
    bias = 1.0 - a
    sign = jnp.where(a < 0.5, -1.0, 1.0)
    off = jnp.where(a < 0.5, 1.0, 0.0)
    params = jnp.stack([scale, bias, sign, off]).astype(jnp.float32)
    w = jnp.reshape(weight, (KT,)).astype(jnp.float32)

    # Per-tap source-validity masks over the flattened H*W lane axis (static,
    # tiny: KH*KW x H*W).  mask[t, i*W+j] == 1 iff the tap source
    # (i + di - PH, j + dj - PW) lies inside the image; 0 elsewhere (the
    # Unfolder's implicit zero padding).
    ii, jj = np.meshgrid(np.arange(H), np.arange(W), indexing="ij")
    masks = np.empty((KT, HW), np.float32)
    for di in range(KH):
        for dj in range(KW):
            oi, oj = di - PH, dj - PW
            valid = ((ii + oi >= 0) & (ii + oi < H) &
                     (jj + oj >= 0) & (jj + oj < W))
            masks[di * KW + dj] = valid.reshape(HW).astype(np.float32)
    masks = jnp.asarray(masks)

    # Transpose-free layout: (B*C, H*W) is a pure (free) reshape of NCHW, so
    # there are no extra HBM passes around the kernel.
    xf = jnp.reshape(x, (BC, HW)).astype(jnp.float32)

    TBC = _choose_sublane_tile(BC, HW)
    grid = (BC // TBC,)

    kernel = functools.partial(_maxplus_atom_kernel,
                               W=W, KH=KH, KW=KW, PH=PH, PW=PW, HW=HW)
    out = pl.pallas_call(
        kernel,
        out_shape=jax.ShapeDtypeStruct((BC, HW), jnp.float32),
        grid=grid,
        in_specs=[
            pl.BlockSpec(memory_space=pltpu.MemorySpace.SMEM),   # params (4,)
            pl.BlockSpec(memory_space=pltpu.MemorySpace.SMEM),   # weight (KT,)
            pl.BlockSpec((KT, HW), lambda i: (0, 0)),            # masks (same block every step -> DMA'd once)
            pl.BlockSpec((TBC, HW), lambda i: (i, 0)),           # input slab
        ],
        out_specs=pl.BlockSpec((TBC, HW), lambda i: (i, 0)),
        compiler_params=pltpu.CompilerParams(
            dimension_semantics=("parallel",)),
    )(params, w, masks, xf)

    return jnp.reshape(out, (B, C, H, W))


def _reference(x, weight, alpha, kernel_size):
    """Pure-JAX reference of the same forward pass."""
    B, C, H, W = x.shape
    KH, KW = kernel_size
    PH, PW = KH // 2, KW // 2
    a = 0.5 * (jnp.tanh(jnp.reshape(alpha, ())) + 1.0)
    comp = a * x + (1.0 - a) * (1.0 - x)
    cp = jnp.pad(comp, ((0, 0), (0, 0), (PH, PH), (PW, PW)))
    acc = jnp.full((B, C, H, W), -jnp.inf, jnp.float32)
    for di in range(KH):
        for dj in range(KW):
            acc = jnp.maximum(acc, cp[:, :, di:di + H, dj:dj + W] + weight[di, dj])
    return jnp.where(a < 0.5, 1.0 - acc, acc)


if __name__ == "__main__":
    kernel_size = (3, 3)

    key = jax.random.PRNGKey(0)
    kx, kw, kx2 = jax.random.split(key, 3)
    weight = jax.random.normal(kw, kernel_size, jnp.float32)     # torch.randn(kernel_size)
    alpha0 = jnp.zeros((1,), jnp.float32)                        # alpha_init = 0 (a == 0.5 exactly)
    alpha_neg = jnp.full((1,), -1.5, jnp.float32)                # a < 0.5 -> complemented branch

    # Small NCHW case (B*C = 8 -> single full-extent sublane block).
    x = jax.random.uniform(kx, (2, 4, 16, 16), jnp.float32)      # image-like in [0, 1]
    for alpha in (alpha0, alpha_neg):
        out = jax.block_until_ready(
            maxplus_atom(x, weight, alpha, kernel_size=kernel_size))
        np.testing.assert_allclose(
            np.asarray(out),
            np.asarray(_reference(x, weight, alpha, kernel_size)),
            rtol=1e-5, atol=1e-5)

    # Larger case (B*C = 256 -> 4 parallel grid steps of 64 sublane rows each).
    x2 = jax.random.uniform(kx2, (2, 128, 16, 16), jnp.float32)
    out2 = jax.block_until_ready(
        maxplus_atom(x2, weight, alpha0, kernel_size=kernel_size))
    np.testing.assert_allclose(
        np.asarray(out2),
        np.asarray(_reference(x2, weight, alpha0, kernel_size)),
        rtol=1e-5, atol=1e-5)

    print("KERNEL_OK")
</pallas_src>

<mosaic_0001>
module attributes {stable_mosaic.version = 11 : i64} {
  func.func @_maxplus_atom_kernel(%arg0: i32, %arg1: memref<4xf32, #tpu.memory_space<smem>>, %arg2: memref<9xf32, #tpu.memory_space<smem>>, %arg3: memref<9x256xf32, #tpu.memory_space<vmem>>, %arg4: memref<8x256xf32, #tpu.memory_space<vmem>>, %arg5: memref<8x256xf32, #tpu.memory_space<vmem>>) attributes {dimension_semantics = [#tpu.dimension_semantics<parallel>], iteration_bounds = array<i64: 1>, scalar_prefetch = 0 : i64, scratch_operands = 0 : i64, tpu.core_type = #tpu.core_type<tc>, window_params = [{transform_indices = @transform_0, window_bounds = array<i64: 4>}, {transform_indices = @transform_1, window_bounds = array<i64: 9>}, {pipeline_mode = #tpu.pipeline_mode<synchronous>, transform_indices = @transform_2, window_bounds = array<i64: 9, 256>}, {transform_indices = @transform_3, window_bounds = array<i64: 8, 256>}, {transform_indices = @transform_4, window_bounds = array<i64: 8, 256>}]} {
    %c0 = arith.constant 0 : index
    %0 = memref.load %arg1[%c0] : memref<4xf32, #tpu.memory_space<smem>>
    %c1 = arith.constant 1 : index
    %1 = memref.load %arg1[%c1] : memref<4xf32, #tpu.memory_space<smem>>
    %c2 = arith.constant 2 : index
    %2 = memref.load %arg1[%c2] : memref<4xf32, #tpu.memory_space<smem>>
    %c3 = arith.constant 3 : index
    %3 = memref.load %arg1[%c3] : memref<4xf32, #tpu.memory_space<smem>>
    %c0_0 = arith.constant 0 : index
    %c0_1 = arith.constant 0 : index
    %4 = vector.load %arg4[%c0_0, %c0_1] : memref<8x256xf32, #tpu.memory_space<vmem>>, vector<8x256xf32>
    %5 = vector.broadcast %0 : f32 to vector<8x256xf32>
    %6 = arith.mulf %5, %4 : vector<8x256xf32>
    %7 = vector.broadcast %1 : f32 to vector<8x256xf32>
    %8 = arith.addf %6, %7 : vector<8x256xf32>
    %c4 = arith.constant 4 : index
    %9 = memref.load %arg2[%c4] : memref<9xf32, #tpu.memory_space<smem>>
    %10 = vector.broadcast %9 : f32 to vector<8x256xf32>
    %11 = arith.addf %8, %10 : vector<8x256xf32>
    %c17_i32 = arith.constant 17 : i32
    %12 = tpu.dynamic_rotate %8 by %c17_i32 dim 1 : vector<8x256xf32>, i32 -> vector<8x256xf32>
    %c0_2 = arith.constant 0 : index
    %c0_3 = arith.constant 0 : index
    %13 = vector.load %arg3[%c0_2, %c0_3] : memref<9x256xf32, #tpu.memory_space<vmem>>, vector<1x256xf32>
    %14 = vector.shape_cast %13 : vector<1x256xf32> to vector<256xf32>
    %15 = vector.shape_cast %14 : vector<256xf32> to vector<1x256xf32>
    %16 = vector.broadcast %15 : vector<1x256xf32> to vector<8x256xf32>
    %17 = arith.mulf %12, %16 : vector<8x256xf32>
    %c0_4 = arith.constant 0 : index
    %18 = memref.load %arg2[%c0_4] : memref<9xf32, #tpu.memory_space<smem>>
    %19 = vector.broadcast %18 : f32 to vector<8x256xf32>
    %20 = arith.addf %17, %19 : vector<8x256xf32>
    %21 = arith.maximumf %11, %20 : vector<8x256xf32>
    %c16_i32 = arith.constant 16 : i32
    %22 = tpu.dynamic_rotate %8 by %c16_i32 dim 1 : vector<8x256xf32>, i32 -> vector<8x256xf32>
    %c1_5 = arith.constant 1 : index
    %c0_6 = arith.constant 0 : index
    %23 = vector.load %arg3[%c1_5, %c0_6] : memref<9x256xf32, #tpu.memory_space<vmem>>, vector<1x256xf32>
    %24 = vector.shape_cast %23 : vector<1x256xf32> to vector<256xf32>
    %25 = vector.shape_cast %24 : vector<256xf32> to vector<1x256xf32>
    %26 = vector.broadcast %25 : vector<1x256xf32> to vector<8x256xf32>
    %27 = arith.mulf %22, %26 : vector<8x256xf32>
    %c1_7 = arith.constant 1 : index
    %28 = memref.load %arg2[%c1_7] : memref<9xf32, #tpu.memory_space<smem>>
    %29 = vector.broadcast %28 : f32 to vector<8x256xf32>
    %30 = arith.addf %27, %29 : vector<8x256xf32>
    %31 = arith.maximumf %21, %30 : vector<8x256xf32>
    %c15_i32 = arith.constant 15 : i32
    %32 = tpu.dynamic_rotate %8 by %c15_i32 dim 1 : vector<8x256xf32>, i32 -> vector<8x256xf32>
    %c2_8 = arith.constant 2 : index
    %c0_9 = arith.constant 0 : index
    %33 = vector.load %arg3[%c2_8, %c0_9] : memref<9x256xf32, #tpu.memory_space<vmem>>, vector<1x256xf32>
    %34 = vector.shape_cast %33 : vector<1x256xf32> to vector<256xf32>
    %35 = vector.shape_cast %34 : vector<256xf32> to vector<1x256xf32>
    %36 = vector.broadcast %35 : vector<1x256xf32> to vector<8x256xf32>
    %37 = arith.mulf %32, %36 : vector<8x256xf32>
    %c2_10 = arith.constant 2 : index
    %38 = memref.load %arg2[%c2_10] : memref<9xf32, #tpu.memory_space<smem>>
    %39 = vector.broadcast %38 : f32 to vector<8x256xf32>
    %40 = arith.addf %37, %39 : vector<8x256xf32>
    %41 = arith.maximumf %31, %40 : vector<8x256xf32>
    %c1_i32 = arith.constant 1 : i32
    %42 = tpu.dynamic_rotate %8 by %c1_i32 dim 1 : vector<8x256xf32>, i32 -> vector<8x256xf32>
    %c3_11 = arith.constant 3 : index
    %c0_12 = arith.constant 0 : index
    %43 = vector.load %arg3[%c3_11, %c0_12] : memref<9x256xf32, #tpu.memory_space<vmem>>, vector<1x256xf32>
    %44 = vector.shape_cast %43 : vector<1x256xf32> to vector<256xf32>
    %45 = vector.shape_cast %44 : vector<256xf32> to vector<1x256xf32>
    %46 = vector.broadcast %45 : vector<1x256xf32> to vector<8x256xf32>
    %47 = arith.mulf %42, %46 : vector<8x256xf32>
    %c3_13 = arith.constant 3 : index
    %48 = memref.load %arg2[%c3_13] : memref<9xf32, #tpu.memory_space<smem>>
    %49 = vector.broadcast %48 : f32 to vector<8x256xf32>
    %50 = arith.addf %47, %49 : vector<8x256xf32>
    %51 = arith.maximumf %41, %50 : vector<8x256xf32>
    %c255_i32 = arith.constant 255 : i32
    %52 = tpu.dynamic_rotate %8 by %c255_i32 dim 1 : vector<8x256xf32>, i32 -> vector<8x256xf32>
    %c5 = arith.constant 5 : index
    %c0_14 = arith.constant 0 : index
    %53 = vector.load %arg3[%c5, %c0_14] : memref<9x256xf32, #tpu.memory_space<vmem>>, vector<1x256xf32>
    %54 = vector.shape_cast %53 : vector<1x256xf32> to vector<256xf32>
    %55 = vector.shape_cast %54 : vector<256xf32> to vector<1x256xf32>
    %56 = vector.broadcast %55 : vector<1x256xf32> to vector<8x256xf32>
    %57 = arith.mulf %52, %56 : vector<8x256xf32>
    %c5_15 = arith.constant 5 : index
    %58 = memref.load %arg2[%c5_15] : memref<9xf32, #tpu.memory_space<smem>>
    %59 = vector.broadcast %58 : f32 to vector<8x256xf32>
    %60 = arith.addf %57, %59 : vector<8x256xf32>
    %61 = arith.maximumf %51, %60 : vector<8x256xf32>
    %c241_i32 = arith.constant 241 : i32
    %62 = tpu.dynamic_rotate %8 by %c241_i32 dim 1 : vector<8x256xf32>, i32 -> vector<8x256xf32>
    %c6 = arith.constant 6 : index
    %c0_16 = arith.constant 0 : index
    %63 = vector.load %arg3[%c6, %c0_16] : memref<9x256xf32, #tpu.memory_space<vmem>>, vector<1x256xf32>
    %64 = vector.shape_cast %63 : vector<1x256xf32> to vector<256xf32>
    %65 = vector.shape_cast %64 : vector<256xf32> to vector<1x256xf32>
    %66 = vector.broadcast %65 : vector<1x256xf32> to vector<8x256xf32>
    %67 = arith.mulf %62, %66 : vector<8x256xf32>
    %c6_17 = arith.constant 6 : index
    %68 = memref.load %arg2[%c6_17] : memref<9xf32, #tpu.memory_space<smem>>
    %69 = vector.broadcast %68 : f32 to vector<8x256xf32>
    %70 = arith.addf %67, %69 : vector<8x256xf32>
    %71 = arith.maximumf %61, %70 : vector<8x256xf32>
    %c240_i32 = arith.constant 240 : i32
    %72 = tpu.dynamic_rotate %8 by %c240_i32 dim 1 : vector<8x256xf32>, i32 -> vector<8x256xf32>
    %c7 = arith.constant 7 : index
    %c0_18 = arith.constant 0 : index
    %73 = vector.load %arg3[%c7, %c0_18] : memref<9x256xf32, #tpu.memory_space<vmem>>, vector<1x256xf32>
    %74 = vector.shape_cast %73 : vector<1x256xf32> to vector<256xf32>
    %75 = vector.shape_cast %74 : vector<256xf32> to vector<1x256xf32>
    %76 = vector.broadcast %75 : vector<1x256xf32> to vector<8x256xf32>
    %77 = arith.mulf %72, %76 : vector<8x256xf32>
    %c7_19 = arith.constant 7 : index
    %78 = memref.load %arg2[%c7_19] : memref<9xf32, #tpu.memory_space<smem>>
    %79 = vector.broadcast %78 : f32 to vector<8x256xf32>
    %80 = arith.addf %77, %79 : vector<8x256xf32>
    %81 = arith.maximumf %71, %80 : vector<8x256xf32>
    %c239_i32 = arith.constant 239 : i32
    %82 = tpu.dynamic_rotate %8 by %c239_i32 dim 1 : vector<8x256xf32>, i32 -> vector<8x256xf32>
    %c8 = arith.constant 8 : index
    %c0_20 = arith.constant 0 : index
    %83 = vector.load %arg3[%c8, %c0_20] : memref<9x256xf32, #tpu.memory_space<vmem>>, vector<1x256xf32>
    %84 = vector.shape_cast %83 : vector<1x256xf32> to vector<256xf32>
    %85 = vector.shape_cast %84 : vector<256xf32> to vector<1x256xf32>
    %86 = vector.broadcast %85 : vector<1x256xf32> to vector<8x256xf32>
    %87 = arith.mulf %82, %86 : vector<8x256xf32>
    %c8_21 = arith.constant 8 : index
    %88 = memref.load %arg2[%c8_21] : memref<9xf32, #tpu.memory_space<smem>>
    %89 = vector.broadcast %88 : f32 to vector<8x256xf32>
    %90 = arith.addf %87, %89 : vector<8x256xf32>
    %91 = arith.maximumf %81, %90 : vector<8x256xf32>
    %92 = vector.broadcast %2 : f32 to vector<8x256xf32>
    %93 = arith.mulf %91, %92 : vector<8x256xf32>
    %94 = vector.broadcast %3 : f32 to vector<8x256xf32>
    %95 = arith.addf %93, %94 : vector<8x256xf32>
    %c0_22 = arith.constant 0 : index
    %c0_23 = arith.constant 0 : index
    %96 = vector.load %arg5[%c0_22, %c0_23] : memref<8x256xf32, #tpu.memory_space<vmem>>, vector<8x256xf32>
    tpu.vector_store %arg5[%c0_22, %c0_23], %95 {strides = array<i32>} : memref<8x256xf32, #tpu.memory_space<vmem>>, vector<8x256xf32>,
    return
  }
  func.func @transform_0(%arg0: i32) -> i32 {
    %c0_i32 = arith.constant 0 : i32
    %c0_i32_0 = arith.constant 0 : i32
    return %c0_i32 : i32
  }
  func.func @transform_1(%arg0: i32) -> i32 {
    %c0_i32 = arith.constant 0 : i32
    %c0_i32_0 = arith.constant 0 : i32
    return %c0_i32 : i32
  }
  func.func @transform_2(%arg0: i32) -> (i32, i32) {
    %c0_i32 = arith.constant 0 : i32
    %c0_i32_0 = arith.constant 0 : i32
    %c0_i32_1 = arith.constant 0 : i32
    return %c0_i32, %c0_i32_0 : i32, i32
  }
  func.func @transform_3(%arg0: i32) -> (i32, i32) {
    %c0_i32 = arith.constant 0 : i32
    %c0_i32_0 = arith.constant 0 : i32
    return %arg0, %c0_i32 : i32, i32
  }
  func.func @transform_4(%arg0: i32) -> (i32, i32) {
    %c0_i32 = arith.constant 0 : i32
    %c0_i32_0 = arith.constant 0 : i32
    return %arg0, %c0_i32 : i32, i32
  }
}

</mosaic_0001>

<bundles_post_ra>
// kernel: maxplus_atom.1
= control target key start
LH: loop header
LB: loop body
LE: loop exit
PB: predicated region body
PF: predicated region fallthrough
CT: control target
= control target key end

     0   :  { %9 = vsyncpa [#allocation3], 0  ;;  %s518_s0 = inlined_call_operand.vmem [shape: f32[4], index: 0, kind: input, shape index: {}]   ;;  %s519_s1 = inlined_call_operand.vmem [shape: f32[9], index: 1, kind: input, shape index: {}]   ;;  %s520_s2 = inlined_call_operand.vmem [shape: f32[9,256], index: 2, kind: input, shape index: {}]   ;;  %s521_s3 = inlined_call_operand.vmem [shape: f32[8,256], index: 3, kind: input, shape index: {}]   ;;  %s522_s4 = inlined_call_operand.vmem [shape: f32[8,256], index: 4, kind: output, shape index: {}]  }
   0x1   :  { %s17_s17 = sshll.u32 %s518_s0, 4  ;;  %s18_s17 = int_to_ptr.vmem [resolvable:$true] %s17_s17 }
   0x2   :  { %10 = vsyncpa [#allocation5], 0  ;;  %s27_s20 = sshll.u32 %s519_s1, 4  ;;  %s325_s21 = scalar_lea.vmem %s18_s17, 16  ;;  %s28_s20 = int_to_ptr.vmem [resolvable:$true] %s27_s20 }
   0x3   :  { %p326_p0 = scmp.ne.s32.totalorder %s18_s17, %s325_s21  ;;  %p330_p1 = scmp.lt.s32.totalorder %s18_s17, %s18_s17 }
   0x4   :  { %p331_p2 = scmp.lt.s32.totalorder %s325_s21, %s325_s21 }
   0x6   :  { %p332_p3 = por %p331_p2, %p330_p1 }
   0x8   :  { %p333_p4 = pnand %p332_p3, %p326_p0 }
   0xa   :  { %336 = shalt.err (!%p333_p4)
}
   0xb   :  { %s353_s22 = smov [#allocation2]   ;;  %s337_s23 = scalar_lea.vmem %s28_s20, 16 }
   0xc   :  { %20 = dma.vmem_to_smem %s18_s17, 16, %s353_s22, [#allocation3]  }
   0xd   :  { %p338_p5 = scmp.ne.s32.totalorder %s28_s20, %s337_s23  ;;  %p342_p6 = scmp.lt.s32.totalorder %s28_s20, %s28_s20 }
   0xe   :  { %p343_p7 = scmp.lt.s32.totalorder %s337_s23, %s337_s23 }
  0x10   :  { %p344_p8 = por %p343_p7, %p342_p6 }
  0x12   :  { %p345_p9 = pnand %p344_p8, %p338_p5 }
  0x14   :  { %348 = shalt.err (!%p345_p9)
}
  0x15   :  { %s354_s0 = smov [#allocation4]  }
  0x16   :  { %30 = dma.vmem_to_smem %s28_s20, 16, %s354_s0, [#allocation5]  }
  0x17   :  { %349 = dma.done.wait [#allocation3], 16  }
  0x18   :  { %350 = vsyncadd [#allocation3], 4294967280 }
  0x19   :  { %351 = dma.done.wait [#allocation5], 16  }
  0x1a   :  { %352 = vsyncadd [#allocation5], 4294967280 }
  0x1b   :  { %41 = sfence }
  0x1c   :  { %s42_s1 = sld [smem:[#allocation2]]  ;;  %v46_v0 = vld [vmem:[%s521_s3] sm:$0xff]  ;;  %v47_v1 = vld [vmem:[%s521_s3 + $0x8] sm:$0xff]  ;;  %s355_s29 = smov 16   ;;  %v62_v8 = vlaneseq }
  0x1d   :  { %s297_s24 = sld [smem:[#allocation2 + $0x1]]  ;;  %s356_s30 = smov 17   ;;  %v67_v15 = vld [vmem:[%s520_s2] ss:$8 sm:$0x3] }
  0x1e   :  { %s357_s5 = smov 15   ;;  %s358_s3 = smov 1   ;;  %v70_v9 = vshrl.u32 %v62_v8, 7  ;;  %v410_v10 = vand.u32 127, %v62_v8 }
  0x1f   :  { %s359_s6 = smov 127   ;;  %s360_s7 = smov 113   ;;  %v301_v20 = vld [vmem:[%s520_s2 + $0x1] ss:$8 sm:$0x3] }
  0x20   :  { %s361_s8 = smov 112   ;;  %s362_s9 = smov 111   ;;  %v412_v11 = vsub.s32 0, %v70_v9  ;;  %v414_v12 = vsub.s32 1, %v70_v9  ;;  %vm64_vm0 = vcmp.lt.s32.totalorder %v410_v10, 17  ;;  %vm91_vm1 = vcmp.lt.s32.totalorder %v410_v10, 16 }
  0x21   :  { %s416_s10 = sld [smem:[#allocation4 + $0x4]]  ;;  %v303_v25 = vld [vmem:[%s520_s2 + $0x2] ss:$8 sm:$0x3]  ;;  %vm119_vm2 = vcmp.lt.s32.totalorder %v410_v10, 15  ;;  %vm147_vm3 = vcmp.lt.s32.totalorder %v410_v10, 1 }
  0x22   :  { %v48_v2 = vstv %s42_s1  ;;  %s421_s13 = sld [smem:[#allocation4]]  ;;  %v72_v16 = vrot.slane %v67_v15, %v412_v11  ;;  %v76_v17 = vrot.slane %v67_v15, %v414_v12  ;;  %v100_v26 = vrot.slane %v301_v20, %v412_v11  ;;  %v305_v36 = vld [vmem:[%s520_s2 + $0x3] ss:$8 sm:$0x3] }
  0x23   :  { %v49_v3 = vmul.f32 %v48_v2, %v46_v0  ;;  %v51_v4 = vstv %s297_s24  ;;  %v50_v5 = vmul.f32 %v48_v2, %v47_v1  ;;  %s429_s16 = sld [smem:[#allocation4 + $0x1]]  ;;  %v104_v27 = vrot.slane %v301_v20, %v414_v12  ;;  %v307_v41 = vld [vmem:[%s520_s2 + $0x5] ss:$8 sm:$0x3] }
  0x24   :  { %s432_s17 = sld [smem:[#allocation4 + $0x2]]  ;;  %v128_v34 = vrot.slane %v303_v25, %v412_v11  ;;  %v132_v35 = vrot.slane %v303_v25, %v414_v12  ;;  %v156_v49 = vrot.slane %v305_v36, %v412_v11  ;;  %v160_v50 = vrot.slane %v305_v36, %v414_v12  ;;  %v309_v59 = vld [vmem:[%s520_s2 + $0x6] ss:$8 sm:$0x3] }
  0x25   :  { %v400_v6 = vadd.f32 %v51_v4, %v49_v3  ;;  %v53_v7 = vadd.f32 %v51_v4, %v50_v5  ;;  %s441_s20 = sld [smem:[#allocation4 + $0x3]]  ;;  %vm175_vm4 = vcmp.lt.s32.totalorder %v410_v10, 127  ;;  %v184_v54 = vrot.slane %v307_v41, %v412_v11 }
  0x26   :  { %s450_s23 = sld [smem:[#allocation4 + $0x5]]  ;;  %v188_v0 = vrot.slane %v307_v41, %v414_v12  ;;  %vm203_vm5 = vcmp.lt.s32.totalorder %v410_v10, 113  ;;  %v216_v8 = vrot.slane %v309_v59, %v414_v12  ;;  %vm231_vm6 = vcmp.lt.s32.totalorder %v410_v10, 112 }
  0x27   :  { %87 = vrot.lane.b32.xlu1 %v400_v6, %s355_s29  ;;  %58 = vrot.lane.b32.xlu0 %v400_v6, %s356_s30  ;;  %v55_v28 = vstv %s416_s10  ;;  %s456_s24 = sld [smem:[#allocation4 + $0x6]]  ;;  %vm259_vm7 = vcmp.lt.s32.totalorder %v410_v10, 111 }
  0x28   :  { %v82_v29 = vstv %s421_s13  ;;  %v57_v37 = vadd.f32 %v55_v28, %v53_v7  ;;  %v56_v38 = vadd.f32 %v55_v28, %v400_v6  ;;  %s471_s27 = sld [smem:[#allocation4 + $0x7]] }
  0x29   :  { %v110_v48 = vstv %s429_s16 }
  0x2a   :  { %v138_v51 = vstv %s432_s17 }
  0x2b   :  { %89 = vrot.lane.b32.xlu1 %v53_v7, %s355_s29  ;;  %60 = vrot.lane.b32.xlu0 %v53_v7, %s356_s30  ;;  %v166_v62 = vstv %s441_s20 }
  0x2d   :  { %v222_v20 = vstv %s456_s24 }
  0x2f   :  { %117 = vrot.lane.b32.xlu1 %v53_v7, %s357_s5  ;;  %115 = vrot.lane.b32.xlu0 %v400_v6, %s357_s5 }
  0x33   :  { %145 = vrot.lane.b32.xlu1 %v53_v7, %s358_s3  ;;  %143 = vrot.lane.b32.xlu0 %v400_v6, %s358_s3  ;;  %s495_s3 = sld [smem:[#allocation4 + $0x8]] }
  0x37   :  { %173 = vrot.lane.b32.xlu1 %v53_v7, %s359_s6  ;;  %171 = vrot.lane.b32.xlu0 %v400_v6, %s359_s6  ;;  %s299_s6 = sld [smem:[#allocation2 + $0x3]] }
  0x3b   :  { %201 = vrot.lane.b32.xlu1 %v53_v7, %s360_s7  ;;  %199 = vrot.lane.b32.xlu0 %v400_v6, %s360_s7 }
  0x3f   :  { %229 = vrot.lane.b32.xlu1 %v53_v7, %s361_s8  ;;  %227 = vrot.lane.b32.xlu0 %v400_v6, %s361_s8 }
  0x43   :  { %257 = vrot.lane.b32.xlu1 %v53_v7, %s362_s9  ;;  %255 = vrot.lane.b32.xlu0 %v400_v6, %s362_s9  ;;  %v194_v6 = vstv %s450_s23  ;;  %v212_v7 = vrot.slane %v309_v59, %v412_v11 }
  0x99   :  { %v88_v13 = vpop.permute.xlu1 %87  ;;  %v59_v14 = vpop.permute.xlu0 %58 }
  0x9d   :  { %v90_v18 = vpop.permute.xlu1 %89  ;;  %v61_v19 = vpop.permute.xlu0 %60 }
  0x9e   :  { %v65_v21 = vsel %vm64_vm0, %v59_v14, %v61_v19  ;;  %v66_v22 = vsel %vm64_vm0, %v61_v19, %v59_v14  ;;  %v92_v32 = vsel %vm91_vm1, %v88_v13, %v90_v18  ;;  %v93_v33 = vsel %vm91_vm1, %v90_v18, %v88_v13 }
  0x9f   :  { %v79_v23 = vmul.f32 %v72_v16, %v66_v22  ;;  %v80_v24 = vmul.f32 %v76_v17, %v65_v21  ;;  %v107_v42 = vmul.f32 %v100_v26, %v93_v33  ;;  %v108_v43 = vmul.f32 %v104_v27, %v92_v32  ;;  %v311_v16 = vld [vmem:[%s520_s2 + $0x7] ss:$8 sm:$0x3]  ;;  %v313_v26 = vld [vmem:[%s520_s2 + $0x10] ss:$8 sm:$0x3] }
  0xa0   :  { %v250_v33 = vstv %s471_s27  ;;  %s298_s2 = sld [smem:[#allocation2 + $0x2]] }
  0xa1   :  { %v118_v30 = vpop.permute.xlu1 %117  ;;  %v116_v31 = vpop.permute.xlu0 %115  ;;  %v83_v39 = vadd.f32 %v82_v29, %v79_v23  ;;  %v84_v40 = vadd.f32 %v82_v29, %v80_v24  ;;  %v111_v60 = vadd.f32 %v110_v48, %v107_v42  ;;  %v112_v61 = vadd.f32 %v110_v48, %v108_v43 }
  0xa2   :  { %v120_v44 = vsel %vm119_vm2, %v116_v31, %v118_v30  ;;  %v121_v45 = vsel %vm119_vm2, %v118_v30, %v116_v31  ;;  %v240_v29 = vrot.slane %v311_v16, %v412_v11  ;;  %v244_v30 = vrot.slane %v311_v16, %v414_v12 }
  0xa3   :  { %v85_v55 = vmax.f32 %v56_v38, %v83_v39  ;;  %v86_v56 = vmax.f32 %v57_v37, %v84_v40  ;;  %v135_v57 = vmul.f32 %v128_v34, %v121_v45  ;;  %v136_v58 = vmul.f32 %v132_v35, %v120_v44 }
  0xa4   :  { %v268_v38 = vrot.slane %v313_v26, %v412_v11  ;;  %v272_v39 = vrot.slane %v313_v26, %v414_v12 }
  0xa5   :  { %v146_v46 = vpop.permute.xlu1 %145  ;;  %v144_v47 = vpop.permute.xlu0 %143  ;;  %v114_v9 = vmax.f32 %v86_v56, %v112_v61  ;;  %v113_v13 = vmax.f32 %v85_v55, %v111_v60  ;;  %v139_v14 = vadd.f32 %v138_v51, %v135_v57  ;;  %v140_v15 = vadd.f32 %v138_v51, %v136_v58 }
  0xa6   :  { %v148_v52 = vsel %vm147_vm3, %v144_v47, %v146_v46  ;;  %v149_v53 = vsel %vm147_vm3, %v146_v46, %v144_v47 }
  0xa7   :  { %v163_v2 = vmul.f32 %v156_v49, %v149_v53  ;;  %v164_v3 = vmul.f32 %v160_v50, %v148_v52  ;;  %v141_v31 = vmax.f32 %v113_v13, %v139_v14  ;;  %v142_v32 = vmax.f32 %v114_v9, %v140_v15 }
  0xa8   :  { %v278_v52 = vstv %s495_s3 }
  0xa9   :  { %v174_v63 = vpop.permute.xlu1 %173  ;;  %v172_v1 = vpop.permute.xlu0 %171  ;;  %v167_v22 = vadd.f32 %v166_v62, %v163_v2  ;;  %v168_v23 = vadd.f32 %v166_v62, %v164_v3  ;;  %v286_v2 = vstv %s299_s6 }
  0xaa   :  { %v176_v4 = vsel %vm175_vm4, %v172_v1, %v174_v63  ;;  %v177_v5 = vsel %vm175_vm4, %v174_v63, %v172_v1  ;;  %v283_v63 = vstv %s298_s2 }
  0xab   :  { %v191_v17 = vmul.f32 %v184_v54, %v176_v4  ;;  %v192_v18 = vmul.f32 %v188_v0, %v177_v5  ;;  %v169_v40 = vmax.f32 %v141_v31, %v167_v22  ;;  %v170_v41 = vmax.f32 %v142_v32, %v168_v23 }
  0xad   :  { %v202_v19 = vpop.permute.xlu1 %201  ;;  %v200_v21 = vpop.permute.xlu0 %199  ;;  %v195_v34 = vadd.f32 %v194_v6, %v191_v17  ;;  %v196_v35 = vadd.f32 %v194_v6, %v192_v18 }
  0xae   :  { %v204_v24 = vsel %vm203_vm5, %v200_v21, %v202_v19  ;;  %v205_v25 = vsel %vm203_vm5, %v202_v19, %v200_v21 }
  0xaf   :  { %v219_v27 = vmul.f32 %v212_v7, %v204_v24  ;;  %v220_v28 = vmul.f32 %v216_v8, %v205_v25  ;;  %v197_v48 = vmax.f32 %v169_v40, %v195_v34  ;;  %v198_v49 = vmax.f32 %v170_v41, %v196_v35 }
  0xb1   :  { %v230_v36 = vpop.permute.xlu1 %229  ;;  %v228_v37 = vpop.permute.xlu0 %227  ;;  %v223_v44 = vadd.f32 %v222_v20, %v219_v27  ;;  %v224_v45 = vadd.f32 %v222_v20, %v220_v28 }
  0xb2   :  { %v232_v42 = vsel %vm231_vm6, %v228_v37, %v230_v36  ;;  %v233_v43 = vsel %vm231_vm6, %v230_v36, %v228_v37 }
  0xb3   :  { %v247_v46 = vmul.f32 %v240_v29, %v232_v42  ;;  %v248_v47 = vmul.f32 %v244_v30, %v233_v43  ;;  %v225_v55 = vmax.f32 %v197_v48, %v223_v44  ;;  %v226_v56 = vmax.f32 %v198_v49, %v224_v45 }
  0xb5   :  { %v251_v11 = vadd.f32 %v250_v33, %v247_v46  ;;  %v252_v50 = vadd.f32 %v250_v33, %v248_v47  ;;  %v258_v12 = vpop.permute.xlu1 %257  ;;  %v256_v51 = vpop.permute.xlu0 %255 }
  0xb6   :  { %v260_v53 = vsel %vm259_vm7, %v256_v51, %v258_v12  ;;  %v261_v54 = vsel %vm259_vm7, %v258_v12, %v256_v51 }
  0xb7   :  { %v275_v57 = vmul.f32 %v268_v38, %v260_v53  ;;  %v276_v58 = vmul.f32 %v272_v39, %v261_v54  ;;  %v253_v59 = vmax.f32 %v225_v55, %v251_v11  ;;  %v254_v60 = vmax.f32 %v226_v56, %v252_v50 }
  0xb9   :  { %v279_v61 = vadd.f32 %v278_v52, %v275_v57  ;;  %v280_v62 = vadd.f32 %v278_v52, %v276_v58 }
  0xbb   :  { %v281_v0 = vmax.f32 %v253_v59, %v279_v61  ;;  %v282_v1 = vmax.f32 %v254_v60, %v280_v62 }
  0xbd   :  { %v284_v3 = vmul.f32 %v283_v63, %v281_v0  ;;  %v285_v4 = vmul.f32 %v283_v63, %v282_v1 }
  0xbf   :  { %v287_v5 = vadd.f32 %v286_v2, %v284_v3  ;;  %v288_v6 = vadd.f32 %v286_v2, %v285_v4 }
  0xc1   :  { %289 = vst [vmem:[%s522_s4] sm:$0xff] %v287_v5  ;;  %290 = vst [vmem:[%s522_s4 + $0x8] sm:$0xff] %v288_v6 }
  0xc2   :  { %295 = vsyncpa [#allocation3], 1 }
  0xc3   :  { %296 = vsyncpa [#allocation5], 1 }

</bundles_post_ra>
